<compile_context>
chip_gen: v7x
topology: tpu7x:2x2x1
jax: 0.10.0
libtpu: 0.0.40
codegen_flags: <defaults>
</compile_context>

<pallas_src>
import functools
import math

import jax
import jax.numpy as jnp
from jax import lax
from jax.experimental import pallas as pl
from jax.experimental.pallas import tpu as pltpu


# ================================ kernel ====================================

def _arcface_kernel(x_ref, w_ref, label_ref, o_ref, *,
                    s, cos_m, sin_m, th, mm, ls_eps, easy_margin,
                    out_features, block_n, bf16_matmul):
    """One class-stripe of ArcFace logits.

    x_ref:     (B, IN)   f32, grid-invariant
    w_ref:     (TN, IN)  f32, one stripe of class prototypes
    label_ref: (B, 1)    int32, grid-invariant
    o_ref:     (B, TN)   f32 output stripe
    """
    x = x_ref[...].astype(jnp.float32)
    w = w_ref[...].astype(jnp.float32)

    # Row-wise L2 normalization (F.normalize, p=2, dim=1, eps=1e-12).
    # rsqrt lowers to the EUP slot.
    x_inv = lax.rsqrt(jnp.maximum(jnp.sum(x * x, axis=-1, keepdims=True), 1e-24))
    w_inv = lax.rsqrt(jnp.maximum(jnp.sum(w * w, axis=-1, keepdims=True), 1e-24))
    xn = x * x_inv
    wn = w * w_inv

    if bf16_matmul:
        # bf16 operands for MXU peak on v6e/v7x; accumulation stays f32.
        xn = xn.astype(jnp.bfloat16)
        wn = wn.astype(jnp.bfloat16)

    # cosine = xn @ wn.T, contracting the last dims of both operands so no
    # explicit transpose / XLU relayout is emitted.
    cosine = lax.dot_general(xn, wn, (((1,), (1,)), ((), ())),
                             preferred_element_type=jnp.float32)

    # Margin math in f32.  The clamp guards fp overshoot past |cos|=1
    # (torch.sqrt would produce NaN there).
    sine = jnp.sqrt(jnp.maximum(1.0 - cosine * cosine, 0.0))
    phi = cosine * cos_m - sine * sin_m
    if easy_margin:
        phi = jnp.where(cosine > 0.0, phi, cosine)
    else:
        phi = jnp.where(cosine > th, phi, cosine - mm)

    # one_hot via iota == label (replaces torch scatter_).  Columns are offset
    # by the grid position so each stripe compares against global class ids.
    b, tn = cosine.shape
    col = lax.broadcasted_iota(jnp.int32, (b, tn), 1) + pl.program_id(0) * block_n
    is_target = col == label_ref[...]

    if ls_eps > 0.0:
        one_hot = ((1.0 - ls_eps) * is_target.astype(jnp.float32)
                   + ls_eps / out_features)
        out = cosine + one_hot * (phi - cosine)
    else:
        # ls_eps == 0: one_hot is exactly 0/1 -> a single select, no muls.
        out = jnp.where(is_target, phi, cosine)

    o_ref[...] = (out * s).astype(o_ref.dtype)


# ================================ wrapper ===================================

def arcface_forward(inputs, label, weight, *, s=30.0, m=0.3,
                    easy_margin=False, ls_eps=0.0,
                    block_n=512, bf16_matmul=True):
    """ArcFace forward: inputs (B, in_f), label (B,), weight (out_f, in_f)."""
    b, in_features = inputs.shape
    out_features, in_w = weight.shape
    assert in_w == in_features, (in_w, in_features)

    cos_m = math.cos(m)
    sin_m = math.sin(m)
    th = math.cos(math.pi - m)
    mm = math.sin(math.pi - m) * m

    # Pick a lane-aligned stripe width no wider than the (128-padded) class
    # count, then pad the class axis so the grid tiles evenly.  Padded
    # (all-zero) prototype rows give cosine == 0, never match a valid label,
    # and are sliced off below.
    n_pad128 = pl.cdiv(out_features, 128) * 128
    block_n = max(128, min(block_n, n_pad128))
    block_n = (block_n // 128) * 128
    n_pad = pl.cdiv(out_features, block_n) * block_n

    w_p = weight
    if n_pad != out_features:
        w_p = jnp.pad(weight, ((0, n_pad - out_features), (0, 0)))

    label2d = label.astype(jnp.int32).reshape(b, 1)

    kernel = functools.partial(
        _arcface_kernel, s=s, cos_m=cos_m, sin_m=sin_m, th=th, mm=mm,
        ls_eps=ls_eps, easy_margin=easy_margin, out_features=out_features,
        block_n=block_n, bf16_matmul=bf16_matmul)

    out = pl.pallas_call(
        kernel,
        out_shape=jax.ShapeDtypeStruct((b, n_pad), jnp.float32),
        grid=(n_pad // block_n,),
        in_specs=[
            pl.BlockSpec((b, in_features), lambda j: (0, 0)),        # input (invariant)
            pl.BlockSpec((block_n, in_features), lambda j: (j, 0)),  # weight stripe
            pl.BlockSpec((b, 1), lambda j: (0, 0)),                  # label (invariant)
        ],
        out_specs=pl.BlockSpec((b, block_n), lambda j: (0, j)),
        compiler_params=pltpu.CompilerParams(
            dimension_semantics=("parallel",)),
    )(inputs, w_p, label2d)

    if n_pad != out_features:
        out = out[:, :out_features]
    return out


# ============================ plain-JAX reference ===========================

def arcface_reference(inputs, label, weight, *, s=30.0, m=0.3,
                      easy_margin=False, ls_eps=0.0):
    x = inputs / jnp.maximum(
        jnp.linalg.norm(inputs, axis=1, keepdims=True), 1e-12)
    w = weight / jnp.maximum(
        jnp.linalg.norm(weight, axis=1, keepdims=True), 1e-12)
    cosine = x @ w.T
    sine = jnp.sqrt(jnp.maximum(1.0 - cosine ** 2, 0.0))
    cos_m, sin_m = math.cos(m), math.sin(m)
    th, mm = math.cos(math.pi - m), math.sin(math.pi - m) * m
    phi = cosine * cos_m - sine * sin_m
    if easy_margin:
        phi = jnp.where(cosine > 0.0, phi, cosine)
    else:
        phi = jnp.where(cosine > th, phi, cosine - mm)
    one_hot = jax.nn.one_hot(label, weight.shape[0], dtype=cosine.dtype)
    if ls_eps > 0.0:
        one_hot = (1.0 - ls_eps) * one_hot + ls_eps / weight.shape[0]
    return (one_hot * phi + (1.0 - one_hot) * cosine) * s


# ================================== main ====================================

if __name__ == "__main__":
    key = jax.random.PRNGKey(0)
    k_x, k_w, k_l = jax.random.split(key, 3)

    # Small, alignment-friendly shapes: batch multiple of 8 (sublanes),
    # feature/class dims multiples of 128 (lanes).
    B, IN_F, OUT_F = 8, 128, 512

    x = jax.random.normal(k_x, (B, IN_F), jnp.float32)
    bound = math.sqrt(6.0 / (IN_F + OUT_F))                   # xavier_uniform_
    w = jax.random.uniform(k_w, (OUT_F, IN_F), jnp.float32, -bound, bound)
    label = jax.random.randint(k_l, (B,), 0, OUT_F, dtype=jnp.int32)

    out = jax.jit(arcface_forward)(x, label, w)
    out = jax.block_until_ready(out)

    assert out.shape == (B, OUT_F), out.shape
    assert bool(jnp.all(jnp.isfinite(out)))

    ref = arcface_reference(x, label, w)
    max_err = float(jnp.max(jnp.abs(out - ref)))
    # bf16 matmul operands + f32 accumulation: logits (scale s=30) agree to
    # well under 0.1 absolute at these shapes.
    assert bool(jnp.allclose(out, ref, atol=1e-1)), max_err

    print("KERNEL_OK")
</pallas_src>

<mosaic_0001>
module attributes {stable_mosaic.version = 11 : i64} {
  func.func @_arcface_kernel(%arg0: i32, %arg1: memref<8x128xf32, #tpu.memory_space<vmem>>, %arg2: memref<512x128xf32, #tpu.memory_space<vmem>>, %arg3: memref<8x1xi32, #tpu.memory_space<vmem>>, %arg4: memref<8x512xf32, #tpu.memory_space<vmem>>) attributes {dimension_semantics = [#tpu.dimension_semantics<parallel>], iteration_bounds = array<i64: 1>, scalar_prefetch = 0 : i64, scratch_operands = 0 : i64, tpu.core_type = #tpu.core_type<tc>, window_params = [{pipeline_mode = #tpu.pipeline_mode<synchronous>, transform_indices = @transform_0, window_bounds = array<i64: 8, 128>}, {transform_indices = @transform_1, window_bounds = array<i64: 512, 128>}, {pipeline_mode = #tpu.pipeline_mode<synchronous>, transform_indices = @transform_2, window_bounds = array<i64: 8, 1>}, {transform_indices = @transform_3, window_bounds = array<i64: 8, 512>}]} {
    %c0 = arith.constant 0 : index
    %c0_0 = arith.constant 0 : index
    %0 = vector.load %arg1[%c0, %c0_0] : memref<8x128xf32, #tpu.memory_space<vmem>>, vector<8x128xf32>
    %c0_1 = arith.constant 0 : index
    %c0_2 = arith.constant 0 : index
    %1 = vector.load %arg2[%c0_1, %c0_2] : memref<512x128xf32, #tpu.memory_space<vmem>>, vector<512x128xf32>
    %2 = arith.mulf %0, %0 : vector<8x128xf32>
    %cst = arith.constant dense<0.000000e+00> : vector<8xf32>
    %3 = vector.multi_reduction <add>, %2, %cst [1] : vector<8x128xf32> to vector<8xf32>
    %4 = vector.shape_cast %3 : vector<8xf32> to vector<8x1xf32>
    %cst_3 = arith.constant 1.000000e-24 : f32
    %5 = vector.broadcast %cst_3 : f32 to vector<8x1xf32>
    %6 = arith.maximumf %4, %5 : vector<8x1xf32>
    %7 = math.rsqrt %6 : vector<8x1xf32>
    %8 = arith.mulf %1, %1 : vector<512x128xf32>
    %cst_4 = arith.constant dense<0.000000e+00> : vector<512xf32>
    %9 = vector.multi_reduction <add>, %8, %cst_4 [1] : vector<512x128xf32> to vector<512xf32>
    %10 = vector.shape_cast %9 : vector<512xf32> to vector<512x1xf32>
    %cst_5 = arith.constant 1.000000e-24 : f32
    %11 = vector.broadcast %cst_5 : f32 to vector<512x1xf32>
    %12 = arith.maximumf %10, %11 : vector<512x1xf32>
    %13 = math.rsqrt %12 : vector<512x1xf32>
    %14 = vector.broadcast %7 : vector<8x1xf32> to vector<8x128xf32>
    %15 = arith.mulf %0, %14 : vector<8x128xf32>
    %16 = vector.broadcast %13 : vector<512x1xf32> to vector<512x128xf32>
    %17 = arith.mulf %1, %16 : vector<512x128xf32>
    %18 = arith.truncf %15 : vector<8x128xf32> to vector<8x128xbf16>
    %19 = arith.truncf %17 : vector<512x128xf32> to vector<512x128xbf16>
    %cst_6 = arith.constant dense<0.000000e+00> : vector<8x512xf32>
    %20 = tpu.matmul %18, %19, %cst_6 {dimension_numbers = #tpu.dot_dimension_numbers<[1], [1], [0], [0], [0, 0, 1, 0], [], []>} : vector<8x128xbf16>, vector<512x128xbf16>, vector<8x512xf32> -> vector<8x512xf32>
    %21 = arith.mulf %20, %20 : vector<8x512xf32>
    %cst_7 = arith.constant 1.000000e+00 : f32
    %22 = vector.broadcast %cst_7 : f32 to vector<8x512xf32>
    %23 = arith.subf %22, %21 : vector<8x512xf32>
    %cst_8 = arith.constant 0.000000e+00 : f32
    %24 = vector.broadcast %cst_8 : f32 to vector<8x512xf32>
    %25 = arith.maximumf %23, %24 : vector<8x512xf32>
    %26 = math.sqrt %25 : vector<8x512xf32>
    %cst_9 = arith.constant 0.955336511 : f32
    %27 = vector.broadcast %cst_9 : f32 to vector<8x512xf32>
    %28 = arith.mulf %20, %27 : vector<8x512xf32>
    %cst_10 = arith.constant 0.295520216 : f32
    %29 = vector.broadcast %cst_10 : f32 to vector<8x512xf32>
    %30 = arith.mulf %26, %29 : vector<8x512xf32>
    %31 = arith.subf %28, %30 : vector<8x512xf32>
    %cst_11 = arith.constant -0.955336511 : f32
    %32 = vector.broadcast %cst_11 : f32 to vector<8x512xf32>
    %33 = arith.cmpf ogt, %20, %32 : vector<8x512xf32>
    %cst_12 = arith.constant 0.0886560603 : f32
    %34 = vector.broadcast %cst_12 : f32 to vector<8x512xf32>
    %35 = arith.subf %20, %34 : vector<8x512xf32>
    %36 = arith.select %33, %31, %35 : vector<8x512xi1>, vector<8x512xf32>
    %37 = tpu.iota {dimensions = array<i32: 1>} : vector<8x512xi32>
    %c512_i32 = arith.constant 512 : i32
    %38 = arith.muli %arg0, %c512_i32 : i32
    %39 = vector.broadcast %38 : i32 to vector<8x512xi32>
    %40 = arith.addi %37, %39 : vector<8x512xi32>
    %c0_13 = arith.constant 0 : index
    %c0_14 = arith.constant 0 : index
    %41 = vector.load %arg3[%c0_13, %c0_14] : memref<8x1xi32, #tpu.memory_space<vmem>>, vector<8x1xi32>
    %42 = vector.broadcast %41 : vector<8x1xi32> to vector<8x512xi32>
    %43 = arith.cmpi eq, %40, %42 : vector<8x512xi32>
    %44 = arith.select %43, %36, %20 : vector<8x512xi1>, vector<8x512xf32>
    %cst_15 = arith.constant 3.000000e+01 : f32
    %45 = vector.broadcast %cst_15 : f32 to vector<8x512xf32>
    %46 = arith.mulf %44, %45 : vector<8x512xf32>
    %c0_16 = arith.constant 0 : index
    %c0_17 = arith.constant 0 : index
    %47 = vector.load %arg4[%c0_16, %c0_17] : memref<8x512xf32, #tpu.memory_space<vmem>>, vector<8x512xf32>
    tpu.vector_store %arg4[%c0_16, %c0_17], %46 {strides = array<i32>} : memref<8x512xf32, #tpu.memory_space<vmem>>, vector<8x512xf32>,
    return
  }
  func.func @transform_0(%arg0: i32) -> (i32, i32) {
    %c0_i32 = arith.constant 0 : i32
    %c0_i32_0 = arith.constant 0 : i32
    %c0_i32_1 = arith.constant 0 : i32
    return %c0_i32, %c0_i32_0 : i32, i32
  }
  func.func @transform_1(%arg0: i32) -> (i32, i32) {
    %c0_i32 = arith.constant 0 : i32
    %c0_i32_0 = arith.constant 0 : i32
    return %arg0, %c0_i32 : i32, i32
  }
  func.func @transform_2(%arg0: i32) -> (i32, i32) {
    %c0_i32 = arith.constant 0 : i32
    %c0_i32_0 = arith.constant 0 : i32
    %c0_i32_1 = arith.constant 0 : i32
    return %c0_i32, %c0_i32_0 : i32, i32
  }
  func.func @transform_3(%arg0: i32) -> (i32, i32) {
    %c0_i32 = arith.constant 0 : i32
    %c0_i32_0 = arith.constant 0 : i32
    return %c0_i32, %arg0 : i32, i32
  }
}

</mosaic_0001>

<bundles_post_ra>
// kernel: arcface_forward.1
= control target key start
LH: loop header
LB: loop body
LE: loop exit
PB: predicated region body
PF: predicated region fallthrough
CT: control target
= control target key end

     0   :  { %8 = vsyncpa [#allocation3], 0  ;;  %s1375_s0 = inlined_call_operand.vmem [shape: f32[8,128], index: 0, kind: input, shape index: {}]   ;;  %s1376_s1 = inlined_call_operand.hbm [shape: f32[512,128], index: 1, kind: input, shape index: {}]   ;;  %s1377_s2 = inlined_call_operand.vmem [shape: s32[8,1], index: 2, kind: input, shape index: {}]   ;;  %s1378_s3 = inlined_call_operand.hbm [shape: f32[8,512], index: 3, kind: output, shape index: {}]  }
   0x1   :  { %9 = vsyncpa [#allocation4], 0  ;;  %s943_s12 = smov [#allocation2]   ;;  %s895_s16 = scalar_lea.hbm %s1376_s1, 8192 }
   0x2   :  { %s17_s13 = sshll.u32 %s943_s12, 4  ;;  %p896_p0 = scmp.ne.s32.totalorder %s1376_s1, %s895_s16  ;;  %s18_s13 = int_to_ptr.vmem [resolvable:$true] %s17_s13 }
   0x3   :  { %p899_p1 = scmp.lt.u32.totalorder %s895_s16, %s1376_s1 }
   0x5   :  { %p901_p2 = pnand %p899_p1, %p896_p0 }
   0x7   :  { %904 = shalt.err (!%p901_p2)
}
   0x8   :  { %s905_s21 = scalar_lea.vmem %s18_s13, 8192  ;;  %p910_p4 = scmp.lt.s32.totalorder %s18_s13, %s18_s13 }
   0x9   :  { %p906_p3 = scmp.ne.s32.totalorder %s18_s13, %s905_s21  ;;  %p911_p5 = scmp.lt.s32.totalorder %s905_s21, %s905_s21 }
   0xb   :  { %p912_p6 = por %p911_p5, %p910_p4 }
   0xd   :  { %p913_p7 = pnand %p912_p6, %p906_p3 }
   0xf   :  { %916 = shalt.err (!%p913_p7)
}
  0x10   :  { %s944_s22 = smov 128   ;;  %s945_s23 = smov 8  }
  0x11   :  { %23 = dma.hbm_to_vmem [thread:$0]  %s1376_s1, 8192, %s18_s13, [#allocation3], %s944_s22, %s944_s22, %s945_s23  }
  0x12   :  { %939 = dma.done.wait [#allocation3], 8192  }
  0x13   :  { %940 = vsyncadd [#allocation3], 4294959104  ;;  %v980_v0 = vld [vmem:[#allocation2 + $0x180] sm:$0xff]  ;;  %v984_v2 = vld [vmem:[#allocation2 + $0x188] sm:$0xff] }
  0x14   :  { %v982_v1 = vld [vmem:[#allocation2 + $0x80] sm:$0xff]  ;;  %v148_v3 = vmul.f32 %v980_v0, %v980_v0  ;;  %v990_v5 = vld [vmem:[#allocation2 + $0x88] sm:$0xff]  ;;  %v149_v6 = vmul.f32 %v984_v2, %v984_v2  ;;  %v1012_v16 = vld [vmem:[#allocation2 + $0x98] sm:$0xff] }
  0x15   :  { %v116_v4 = vmul.f32 %v982_v1, %v982_v1  ;;  %v117_v7 = vmul.f32 %v990_v5, %v990_v5  ;;  %v996_v8 = vld [vmem:[#allocation2 + $0x8] sm:$0xff]  ;;  %v998_v9 = vld [vmem:[#allocation2] sm:$0xff]  ;;  %v1014_v17 = vld [vmem:[#allocation2 + $0x90] sm:$0xff]  ;;  %v119_v18 = vmul.f32 %v1012_v16, %v1012_v16 }
  0x16   :  { %260 = vadd.xlane.f32.xlu1 %v148_v3  ;;  %v101_v10 = vmul.f32 %v996_v8, %v996_v8  ;;  %v100_v11 = vmul.f32 %v998_v9, %v998_v9  ;;  %v1004_v12 = vld [vmem:[#allocation2 + $0x108] sm:$0xff]  ;;  %v1006_v13 = vld [vmem:[#allocation2 + $0x100] sm:$0xff]  ;;  %v118_v19 = vmul.f32 %v1014_v17, %v1014_v17  ;;  %v1020_v20 = vld [vmem:[#allocation2 + $0x198] sm:$0xff] }
  0x17   :  { %196 = vadd.xlane.f32.xlu0 %v116_v4  ;;  %v133_v14 = vmul.f32 %v1004_v12, %v1004_v12  ;;  %v132_v15 = vmul.f32 %v1006_v13, %v1006_v13  ;;  %v1022_v21 = vld [vmem:[#allocation2 + $0x190] sm:$0xff]  ;;  %v151_v22 = vmul.f32 %v1020_v20, %v1020_v20  ;;  %v1028_v24 = vld [vmem:[#allocation2 + $0x18] sm:$0xff]  ;;  %v1044_v32 = vld [vmem:[#allocation2 + $0xa8] sm:$0xff] }
  0x18   :  { %v150_v23 = vmul.f32 %v1022_v21, %v1022_v21  ;;  %v1030_v25 = vld [vmem:[#allocation2 + $0x10] sm:$0xff]  ;;  %v103_v26 = vmul.f32 %v1028_v24, %v1028_v24  ;;  %v1036_v28 = vld [vmem:[#allocation2 + $0x118] sm:$0xff]  ;;  %v1046_v33 = vld [vmem:[#allocation2 + $0xa0] sm:$0xff]  ;;  %v121_v34 = vmul.f32 %v1044_v32, %v1044_v32 }
  0x19   :  { %v102_v27 = vmul.f32 %v1030_v25, %v1030_v25  ;;  %v1038_v29 = vld [vmem:[#allocation2 + $0x110] sm:$0xff]  ;;  %v135_v30 = vmul.f32 %v1036_v28, %v1036_v28  ;;  %v120_v35 = vmul.f32 %v1046_v33, %v1046_v33  ;;  %v1052_v36 = vld [vmem:[#allocation2 + $0x1a8] sm:$0xff]  ;;  %v1054_v37 = vld [vmem:[#allocation2 + $0x1a0] sm:$0xff] }
  0x1a   :  { %262 = vadd.xlane.f32.xlu1 %v149_v6  ;;  %v134_v31 = vmul.f32 %v1038_v29, %v1038_v29  ;;  %v153_v38 = vmul.f32 %v1052_v36, %v1052_v36  ;;  %v152_v39 = vmul.f32 %v1054_v37, %v1054_v37  ;;  %v1060_v40 = vld [vmem:[#allocation2 + $0x28] sm:$0xff]  ;;  %v1062_v41 = vld [vmem:[#allocation2 + $0x20] sm:$0xff]  ;;  %v1076_v48 = vld [vmem:[#allocation2 + $0xb8] sm:$0xff] }
  0x1b   :  { %198 = vadd.xlane.f32.xlu0 %v117_v7  ;;  %v105_v42 = vmul.f32 %v1060_v40, %v1060_v40  ;;  %v104_v43 = vmul.f32 %v1062_v41, %v1062_v41  ;;  %v1068_v44 = vld [vmem:[#allocation2 + $0x128] sm:$0xff]  ;;  %v1070_v45 = vld [vmem:[#allocation2 + $0x120] sm:$0xff]  ;;  %v1078_v49 = vld [vmem:[#allocation2 + $0xb0] sm:$0xff]  ;;  %v123_v50 = vmul.f32 %v1076_v48, %v1076_v48 }
  0x1c   :  { %v137_v46 = vmul.f32 %v1068_v44, %v1068_v44  ;;  %v136_v47 = vmul.f32 %v1070_v45, %v1070_v45  ;;  %v122_v51 = vmul.f32 %v1078_v49, %v1078_v49  ;;  %v1084_v52 = vld [vmem:[#allocation2 + $0x1b8] sm:$0xff]  ;;  %v1086_v53 = vld [vmem:[#allocation2 + $0x1b0] sm:$0xff]  ;;  %v1108_v3 = vld [vmem:[#allocation2 + $0xc8] sm:$0xff] }
  0x1d   :  { %v155_v54 = vmul.f32 %v1084_v52, %v1084_v52  ;;  %v154_v55 = vmul.f32 %v1086_v53, %v1086_v53  ;;  %v1092_v56 = vld [vmem:[#allocation2 + $0x38] sm:$0xff]  ;;  %v1094_v57 = vld [vmem:[#allocation2 + $0x30] sm:$0xff]  ;;  %v1110_v4 = vld [vmem:[#allocation2 + $0xc0] sm:$0xff]  ;;  %v125_v6 = vmul.f32 %v1108_v3, %v1108_v3 }
  0x1e   :  { %166 = vadd.xlane.f32.xlu1 %v101_v10  ;;  %v107_v58 = vmul.f32 %v1092_v56, %v1092_v56  ;;  %v106_v59 = vmul.f32 %v1094_v57, %v1094_v57  ;;  %v1100_v60 = vld [vmem:[#allocation2 + $0x138] sm:$0xff]  ;;  %v1102_v61 = vld [vmem:[#allocation2 + $0x130] sm:$0xff]  ;;  %v124_v7 = vmul.f32 %v1110_v4, %v1110_v4  ;;  %v1116_v10 = vld [vmem:[#allocation2 + $0x1c8] sm:$0xff] }
  0x1f   :  { %164 = vadd.xlane.f32.xlu0 %v100_v11  ;;  %v139_v62 = vmul.f32 %v1100_v60, %v1100_v60  ;;  %v138_v63 = vmul.f32 %v1102_v61, %v1102_v61  ;;  %v1118_v11 = vld [vmem:[#allocation2 + $0x1c0] sm:$0xff] }
  0x22   :  { %230 = vadd.xlane.f32.xlu1 %v133_v14  ;;  %v157_v14 = vmul.f32 %v1116_v10, %v1116_v10 }
  0x23   :  { %228 = vadd.xlane.f32.xlu0 %v132_v15  ;;  %v156_v15 = vmul.f32 %v1118_v11, %v1118_v11 }
  0x26   :  { %202 = vadd.xlane.f32.xlu1 %v119_v18  ;;  %v1124_v18 = vld [vmem:[#allocation2 + $0x48] sm:$0xff] }
  0x27   :  { %200 = vadd.xlane.f32.xlu0 %v118_v19  ;;  %v1126_v19 = vld [vmem:[#allocation2 + $0x40] sm:$0xff] }
  0x2a   :  { %266 = vadd.xlane.f32.xlu1 %v151_v22  ;;  %v109_v22 = vmul.f32 %v1124_v18, %v1124_v18 }
  0x2b   :  { %264 = vadd.xlane.f32.xlu0 %v150_v23  ;;  %v108_v23 = vmul.f32 %v1126_v19, %v1126_v19 }
  0x2e   :  { %170 = vadd.xlane.f32.xlu1 %v103_v26  ;;  %v1132_v26 = vld [vmem:[#allocation2 + $0x148] sm:$0xff] }
  0x2f   :  { %168 = vadd.xlane.f32.xlu0 %v102_v27  ;;  %v1134_v27 = vld [vmem:[#allocation2 + $0x140] sm:$0xff] }
  0x32   :  { %234 = vadd.xlane.f32.xlu1 %v135_v30  ;;  %v141_v30 = vmul.f32 %v1132_v26, %v1132_v26 }
  0x33   :  { %232 = vadd.xlane.f32.xlu0 %v134_v31  ;;  %v140_v31 = vmul.f32 %v1134_v27, %v1134_v27 }
  0x36   :  { %206 = vadd.xlane.f32.xlu1 %v121_v34  ;;  %v1140_v34 = vld [vmem:[#allocation2 + $0xd8] sm:$0xff] }
  0x37   :  { %204 = vadd.xlane.f32.xlu0 %v120_v35  ;;  %v1142_v35 = vld [vmem:[#allocation2 + $0xd0] sm:$0xff] }
  0x3a   :  { %270 = vadd.xlane.f32.xlu1 %v153_v38  ;;  %v127_v38 = vmul.f32 %v1140_v34, %v1140_v34 }
  0x3b   :  { %268 = vadd.xlane.f32.xlu0 %v152_v39  ;;  %v126_v39 = vmul.f32 %v1142_v35, %v1142_v35 }
  0x3e   :  { %174 = vadd.xlane.f32.xlu1 %v105_v42  ;;  %v1148_v42 = vld [vmem:[#allocation2 + $0x1d8] sm:$0xff] }
  0x3f   :  { %172 = vadd.xlane.f32.xlu0 %v104_v43  ;;  %v1150_v43 = vld [vmem:[#allocation2 + $0x1d0] sm:$0xff] }
  0x42   :  { %238 = vadd.xlane.f32.xlu1 %v137_v46  ;;  %v159_v46 = vmul.f32 %v1148_v42, %v1148_v42 }
  0x43   :  { %236 = vadd.xlane.f32.xlu0 %v136_v47  ;;  %v158_v47 = vmul.f32 %v1150_v43, %v1150_v43 }
  0x46   :  { %210 = vadd.xlane.f32.xlu1 %v123_v50  ;;  %v1156_v50 = vld [vmem:[#allocation2 + $0x58] sm:$0xff] }
  0x47   :  { %208 = vadd.xlane.f32.xlu0 %v122_v51  ;;  %v1158_v51 = vld [vmem:[#allocation2 + $0x50] sm:$0xff] }
  0x48   :  { %1399 = vst [vmem:[#allocation8_spill] sm:$0xff] %v1158_v51 }
  0x4a   :  { %274 = vadd.xlane.f32.xlu1 %v155_v54  ;;  %v111_v54 = vmul.f32 %v1156_v50, %v1156_v50 }
  0x4b   :  { %272 = vadd.xlane.f32.xlu0 %v154_v55  ;;  %v110_v55 = vmul.f32 %v1158_v51, %v1158_v51 }
  0x4e   :  { %178 = vadd.xlane.f32.xlu1 %v107_v58  ;;  %v1164_v58 = vld [vmem:[#allocation2 + $0x158] sm:$0xff] }
  0x4f   :  { %176 = vadd.xlane.f32.xlu0 %v106_v59  ;;  %1400 = vst [vmem:[#allocation9_spill] sm:$0xff] %v1164_v58  ;;  %v1166_v59 = vld [vmem:[#allocation2 + $0x150] sm:$0xff] }
  0x50   :  { %1401 = vst [vmem:[#allocation10_spill] sm:$0xff] %v1166_v59 }
  0x52   :  { %242 = vadd.xlane.f32.xlu1 %v139_v62  ;;  %v143_v62 = vmul.f32 %v1164_v58, %v1164_v58 }
  0x53   :  { %240 = vadd.xlane.f32.xlu0 %v138_v63  ;;  %v142_v63 = vmul.f32 %v1166_v59, %v1166_v59 }
  0x56   :  { %214 = vadd.xlane.f32.xlu1 %v125_v6  ;;  %v1172_v6 = vld [vmem:[#allocation2 + $0xe8] sm:$0xff] }
  0x57   :  { %212 = vadd.xlane.f32.xlu0 %v124_v7  ;;  %1402 = vst [vmem:[#allocation11_spill] sm:$0xff] %v1172_v6  ;;  %v1174_v7 = vld [vmem:[#allocation2 + $0xe0] sm:$0xff] }
  0x58   :  { %1403 = vst [vmem:[#allocation12_spill] sm:$0xff] %v1174_v7 }
  0x5a   :  { %278 = vadd.xlane.f32.xlu1 %v157_v14  ;;  %v129_v14 = vmul.f32 %v1172_v6, %v1172_v6 }
  0x5b   :  { %276 = vadd.xlane.f32.xlu0 %v156_v15  ;;  %v128_v15 = vmul.f32 %v1174_v7, %v1174_v7 }
  0x5e   :  { %182 = vadd.xlane.f32.xlu1 %v109_v22  ;;  %v1180_v22 = vld [vmem:[#allocation2 + $0x1e8] sm:$0xff] }
  0x5f   :  { %180 = vadd.xlane.f32.xlu0 %v108_v23  ;;  %1404 = vst [vmem:[#allocation13_spill] sm:$0xff] %v1180_v22  ;;  %v1182_v23 = vld [vmem:[#allocation2 + $0x1e0] sm:$0xff] }
  0x60   :  { %1405 = vst [vmem:[#allocation14_spill] sm:$0xff] %v1182_v23 }
  0x62   :  { %246 = vadd.xlane.f32.xlu1 %v141_v30  ;;  %v161_v30 = vmul.f32 %v1180_v22, %v1180_v22 }
  0x63   :  { %244 = vadd.xlane.f32.xlu0 %v140_v31  ;;  %v160_v31 = vmul.f32 %v1182_v23, %v1182_v23 }
  0x66   :  { %218 = vadd.xlane.f32.xlu1 %v127_v38  ;;  %v1188_v38 = vld [vmem:[#allocation2 + $0x68] sm:$0xff] }
  0x67   :  { %216 = vadd.xlane.f32.xlu0 %v126_v39  ;;  %1406 = vst [vmem:[#allocation15_spill] sm:$0xff] %v1188_v38  ;;  %v1190_v39 = vld [vmem:[#allocation2 + $0x60] sm:$0xff] }
  0x68   :  { %1407 = vst [vmem:[#allocation16_spill] sm:$0xff] %v1190_v39 }
  0x6a   :  { %282 = vadd.xlane.f32.xlu1 %v159_v46  ;;  %v113_v46 = vmul.f32 %v1188_v38, %v1188_v38 }
  0x6b   :  { %280 = vadd.xlane.f32.xlu0 %v158_v47  ;;  %v112_v47 = vmul.f32 %v1190_v39, %v1190_v39 }
  0x6e   :  { %186 = vadd.xlane.f32.xlu1 %v111_v54  ;;  %v1196_v54 = vld [vmem:[#allocation2 + $0x168] sm:$0xff] }
  0x6f   :  { %184 = vadd.xlane.f32.xlu0 %v110_v55  ;;  %1408 = vst [vmem:[#allocation17_spill] sm:$0xff] %v1196_v54  ;;  %v1198_v55 = vld [vmem:[#allocation2 + $0x160] sm:$0xff] }
  0x70   :  { %1409 = vst [vmem:[#allocation18_spill] sm:$0xff] %v1198_v55 }
  0x72   :  { %250 = vadd.xlane.f32.xlu1 %v143_v62  ;;  %v145_v62 = vmul.f32 %v1196_v54, %v1196_v54 }
  0x73   :  { %248 = vadd.xlane.f32.xlu0 %v142_v63  ;;  %v144_v63 = vmul.f32 %v1198_v55, %v1198_v55 }
  0x76   :  { %222 = vadd.xlane.f32.xlu1 %v129_v14  ;;  %v1204_v14 = vld [vmem:[#allocation2 + $0xf8] sm:$0xff] }
  0x77   :  { %220 = vadd.xlane.f32.xlu0 %v128_v15  ;;  %1410 = vst [vmem:[#allocation19_spill] sm:$0xff] %v1204_v14  ;;  %v1206_v15 = vld [vmem:[#allocation2 + $0xf0] sm:$0xff] }
  0x78   :  { %1411 = vst [vmem:[#allocation20_spill] sm:$0xff] %v1206_v15 }
  0x7a   :  { %286 = vadd.xlane.f32.xlu1 %v161_v30  ;;  %v131_v30 = vmul.f32 %v1204_v14, %v1204_v14 }
  0x7b   :  { %284 = vadd.xlane.f32.xlu0 %v160_v31  ;;  %v130_v31 = vmul.f32 %v1206_v15, %v1206_v15 }
  0x7e   :  { %190 = vadd.xlane.f32.xlu1 %v113_v46  ;;  %v1212_v46 = vld [vmem:[#allocation2 + $0x1f8] sm:$0xff] }
  0x7f   :  { %188 = vadd.xlane.f32.xlu0 %v112_v47  ;;  %1412 = vst [vmem:[#allocation21_spill] sm:$0xff] %v1212_v46  ;;  %v1214_v47 = vld [vmem:[#allocation2 + $0x1f0] sm:$0xff]  ;;  %v163_v55 = vmul.f32 %v1212_v46, %v1212_v46 }
  0x80   :  { %1413 = vst [vmem:[#allocation22_spill] sm:$0xff] %v1214_v47  ;;  %v162_v54 = vmul.f32 %v1214_v47, %v1214_v47 }
  0x82   :  { %254 = vadd.xlane.f32.xlu1 %v145_v62  ;;  %v1220_v62 = vld [vmem:[#allocation2 + $0x78] sm:$0xff] }
  0x83   :  { %252 = vadd.xlane.f32.xlu0 %v144_v63  ;;  %1414 = vst [vmem:[#allocation23_spill] sm:$0xff] %v1220_v62  ;;  %v1222_v63 = vld [vmem:[#allocation2 + $0x70] sm:$0xff]  ;;  %v115_v15 = vmul.f32 %v1220_v62, %v1220_v62 }
  0x84   :  { %1415 = vst [vmem:[#allocation24_spill] sm:$0xff] %v1222_v63  ;;  %v114_v14 = vmul.f32 %v1222_v63, %v1222_v63 }
  0x86   :  { %226 = vadd.xlane.f32.xlu1 %v131_v30  ;;  %v1228_v30 = vld [vmem:[#allocation2 + $0x178] sm:$0xff] }
  0x87   :  { %224 = vadd.xlane.f32.xlu0 %v130_v31  ;;  %1416 = vst [vmem:[#allocation25_spill] sm:$0xff] %v1228_v30  ;;  %v1230_v31 = vld [vmem:[#allocation2 + $0x170] sm:$0xff]  ;;  %v147_v47 = vmul.f32 %v1228_v30, %v1228_v30 }
  0x88   :  { %1417 = vst [vmem:[#allocation26_spill] sm:$0xff] %v1230_v31  ;;  %v146_v46 = vmul.f32 %v1230_v31, %v1230_v31 }
  0x8a   :  { %290 = vadd.xlane.f32.xlu1 %v163_v55 }
  0x8b   :  { %288 = vadd.xlane.f32.xlu0 %v162_v54  ;;  %v1239_v54 = vld [vmem:[%s1375_s0] sm:$0xff] }
  0x8c   :  { %1418 = vst [vmem:[#allocation27_spill] sm:$0xff] %v1239_v54  ;;  %v95_v55 = vmul.f32 %v1239_v54, %v1239_v54 }
  0x8e   :  { %194 = vadd.xlane.f32.xlu1 %v115_v15 }
  0x8f   :  { %192 = vadd.xlane.f32.xlu0 %v114_v14 }
  0x92   :  { %258 = vadd.xlane.f32.xlu1 %v147_v47 }
  0x93   :  { %256 = vadd.xlane.f32.xlu0 %v146_v46 }
  0x97   :  { %96 = vadd.xlane.f32.xlu0 %v95_v55 }
  0xa3   :  { %v261_v63 = vpop.xlane.xlu1 %260 }
  0xa4   :  { %v197_v15 = vpop.xlane.xlu0 %196  ;;  %v340_v14 = vmax.f32 %v261_v63, 1e-24 }
  0xa5   :  { %v308_v62 = vmax.f32 %v197_v15, 1e-24 }
  0xa6   :  { %757 = vrsqrt.f32 %v340_v14 }
  0xa7   :  { %v263_v39 = vpop.xlane.xlu1 %262  ;;  %759 = vrsqrt.f32 %v308_v62 }
  0xa8   :  { %v199_v30 = vpop.xlane.xlu0 %198  ;;  %v341_v38 = vmax.f32 %v263_v39, 1e-24 }
  0xa9   :  { %v309_v31 = vmax.f32 %v199_v30, 1e-24 }
  0xaa   :  { %761 = vrsqrt.f32 %v341_v38 }
  0xab   :  { %763 = vrsqrt.f32 %v309_v31  ;;  %v167_v23 = vpop.xlane.xlu1 %166 }
  0xac   :  { %v165_v22 = vpop.xlane.xlu0 %164  ;;  %v293_v47 = vmax.f32 %v167_v23, 1e-24 }
  0xad   :  { %v292_v46 = vmax.f32 %v165_v22, 1e-24 }
  0xae   :  { %765 = vrsqrt.f32 %v293_v47 }
  0xaf   :  { %767 = vrsqrt.f32 %v292_v46  ;;  %v231_v54 = vpop.xlane.xlu1 %230 }
  0xb0   :  { %v229_v55 = vpop.xlane.xlu0 %228  ;;  %v325_v7 = vmax.f32 %v231_v54, 1e-24  ;;  %v758_v63 = vpop.eup %757 }
  0xb1   :  { %v324_v6 = vmax.f32 %v229_v55, 1e-24  ;;  %v760_v15 = vpop.eup %759  ;;  %v469_v59 = vmul.f32 %v758_v63, %v980_v0  ;;  %v675_v0 = vld [vmem:[%s1377_s2] sm:$0xff]  ;;  %s947_s2 = smov [#allocation5]  }
  0xb2   :  { %769 = vrsqrt.f32 %v325_v7  ;;  %v437_v23 = vmul.f32 %v760_v15, %v982_v1  ;;  %s701_s28 = sshll.u32 %s947_s2, 4  ;;  %s702_s28 = int_to_ptr.vmem [resolvable:$true] %s701_s28 }
  0xb3   :  { %771 = vrsqrt.f32 %v324_v6  ;;  %v203_v14 = vpop.xlane.xlu1 %202  ;;  %s917_s29 = scalar_lea.vmem %s702_s28, 512  ;;  %p922_p9 = scmp.lt.s32.totalorder %s702_s28, %s702_s28 }
  0xb4   :  { %v201_v39 = vpop.xlane.xlu0 %200  ;;  %v762_v30 = vpop.eup %761  ;;  %v311_v62 = vmax.f32 %v203_v14, 1e-24  ;;  %p918_p8 = scmp.ne.s32.totalorder %s702_s28, %s917_s29  ;;  %p923_p10 = scmp.lt.s32.totalorder %s917_s29, %s917_s29 }
  0xb5   :  { %v310_v38 = vmax.f32 %v201_v39, 1e-24  ;;  %v764_v31 = vpop.eup %763  ;;  %v470_v22 = vmul.f32 %v762_v30, %v984_v2  ;;  %v946_v2 = vmov 0  }
  0xb6   :  { %773 = vrsqrt.f32 %v311_v62  ;;  %v438_v54 = vmul.f32 %v764_v31, %v990_v5  ;;  %755 = vset.pattern.permute.xlu1 %v946_v2  ;;  %756 = vset.pattern.permute.xlu0 %v946_v2  ;;  %p924_p11 = por %p923_p10, %p922_p9 }
  0xb7   :  { %775 = vrsqrt.f32 %v310_v38  ;;  %v267_v47 = vpop.xlane.xlu1 %266  ;;  %v510_v46 = vpack.c.bf16 %v470_v22, %v469_v59  ;;  %677 = vperm.xlu1 %755, %v675_v0  }
  0xb8   :  { %v265_v7 = vpop.xlane.xlu0 %264  ;;  %v766_v6 = vpop.eup %765  ;;  %v343_v55 = vmax.f32 %v267_v47, 1e-24  ;;  %v494_v51 = vpack.c.bf16 %v438_v54, %v437_v23  ;;  %p925_p12 = pnand %p924_p11, %p918_p8 }
  0xb9   :  { %v342_v58 = vmax.f32 %v265_v7, 1e-24  ;;  %v768_v14 = vpop.eup %767  ;;  %732 = vmatprep.subr.bf16.mxu1 %v510_v46  ;;  %v422_v39 = vmul.f32 %v766_v6, %v996_v8 }
  0xba   :  { %777 = vrsqrt.f32 %v343_v55  ;;  %714 = vmatprep.subr.bf16.mxu0 %v494_v51  ;;  %v421_v1 = vmul.f32 %v768_v14, %v998_v9 }
  0xbb   :  { %779 = vrsqrt.f32 %v342_v58  ;;  %v171_v5 = vpop.xlane.xlu1 %170 }
  0xbc   :  { %v169_v59 = vpop.xlane.xlu0 %168  ;;  %v770_v63 = vpop.eup %769  ;;  %v295_v15 = vmax.f32 %v171_v5, 1e-24  ;;  %v486_v62 = vpack.c.bf16 %v422_v39, %v421_v1 }
  0xbd   :  { %v294_v30 = vmax.f32 %v169_v59, 1e-24  ;;  %v772_v8 = vpop.eup %771  ;;  %v454_v38 = vmul.f32 %v770_v63, %v1004_v12 }
  0xbe   :  { %781 = vrsqrt.f32 %v295_v15  ;;  %715 = vmatpush3.bf16.xpose.msra.mxu0 %v486_v62  ;;  %v453_v51 = vmul.f32 %v772_v8, %v1006_v13 }
  0xbf   :  { %783 = vrsqrt.f32 %v294_v30  ;;  %v235_v9 = vpop.xlane.xlu1 %234 }
  0xc0   :  { %v233_v31 = vpop.xlane.xlu0 %232  ;;  %v774_v22 = vpop.eup %773  ;;  %v327_v58 = vmax.f32 %v235_v9, 1e-24  ;;  %v502_v54 = vpack.c.bf16 %v454_v38, %v453_v51 }
  0xc1   :  { %v326_v23 = vmax.f32 %v233_v31, 1e-24  ;;  %v776_v47 = vpop.eup %775  ;;  %v440_v7 = vmul.f32 %v774_v22, %v1012_v16 }
  0xc2   :  { %785 = vrsqrt.f32 %v327_v58  ;;  %733 = vmatpush3.bf16.xpose.msra.mxu1 %v502_v54  ;;  %v439_v46 = vmul.f32 %v776_v47, %v1014_v17 }
  0xc3   :  { %787 = vrsqrt.f32 %v326_v23  ;;  %v207_v12 = vpop.xlane.xlu1 %206 }
  0xc4   :  { %v205_v6 = vpop.xlane.xlu0 %204  ;;  %v778_v55 = vpop.eup %777  ;;  %v313_v14 = vmax.f32 %v207_v12, 1e-24  ;;  %v495_v39 = vpack.c.bf16 %v440_v7, %v439_v46 }
  0xc5   :  { %v312_v13 = vmax.f32 %v205_v6, 1e-24  ;;  %v780_v0 = vpop.eup %779  ;;  %v472_v1 = vmul.f32 %v778_v55, %v1020_v20 }
  0xc6   :  { %789 = vrsqrt.f32 %v313_v14  ;;  %716 = vmatprep.subr.bf16.mxu0 %v495_v39  ;;  %v471_v2 = vmul.f32 %v780_v0, %v1022_v21 }
  0xc7   :  { %791 = vrsqrt.f32 %v312_v13  ;;  %v271_v16 = vpop.xlane.xlu1 %270 }
  0xc8   :  { %v269_v5 = vpop.xlane.xlu0 %268  ;;  %v782_v59 = vpop.eup %781  ;;  %v345_v63 = vmax.f32 %v271_v16, 1e-24  ;;  %v511_v15 = vpack.c.bf16 %v472_v1, %v471_v2 }
  0xc9   :  { %v344_v17 = vmax.f32 %v269_v5, 1e-24  ;;  %v784_v30 = vpop.eup %783  ;;  %v424_v62 = vmul.f32 %v782_v59, %v1028_v24 }
  0xca   :  { %793 = vrsqrt.f32 %v345_v63  ;;  %734 = vmatprep.subr.bf16.mxu1 %v511_v15  ;;  %v423_v8 = vmul.f32 %v784_v30, %v1030_v25 }
  0xcb   :  { %795 = vrsqrt.f32 %v344_v17  ;;  %v175_v20 = vpop.xlane.xlu1 %174 }
  0xcc   :  { %v173_v38 = vpop.xlane.xlu0 %172  ;;  %v786_v51 = vpop.eup %785  ;;  %v297_v9 = vmax.f32 %v175_v20, 1e-24  ;;  %v487_v31 = vpack.c.bf16 %v424_v62, %v423_v8 }
  0xcd   :  { %v296_v21 = vmax.f32 %v173_v38, 1e-24  ;;  %v788_v22 = vpop.eup %787  ;;  %v456_v58 = vmul.f32 %v786_v51, %v1036_v28 }
  0xce   :  { %797 = vrsqrt.f32 %v297_v9  ;;  %717 = vmatpush3.bf16.xpose.msra.mxu0 %v487_v31  ;;  %v455_v23 = vmul.f32 %v788_v22, %v1038_v29 }
  0xcf   :  { %799 = vrsqrt.f32 %v296_v21  ;;  %v239_v24 = vpop.xlane.xlu1 %238 }
  0xd0   :  { %v237_v54 = vpop.xlane.xlu0 %236  ;;  %v790_v47 = vpop.eup %789  ;;  %v329_v7 = vmax.f32 %v239_v24, 1e-24  ;;  %v503_v46 = vpack.c.bf16 %v456_v58, %v455_v23 }
  0xd1   :  { %v328_v25 = vmax.f32 %v237_v54, 1e-24  ;;  %v792_v12 = vpop.eup %791  ;;  %v442_v6 = vmul.f32 %v790_v47, %v1044_v32 }
  0xd2   :  { %801 = vrsqrt.f32 %v329_v7  ;;  %735 = vmatpush3.bf16.xpose.msra.mxu1 %v503_v46  ;;  %v441_v55 = vmul.f32 %v792_v12, %v1046_v33 }
  0xd3   :  { %803 = vrsqrt.f32 %v328_v25  ;;  %v211_v28 = vpop.xlane.xlu1 %210 }
  0xd4   :  { %v209_v14 = vpop.xlane.xlu0 %208  ;;  %v794_v13 = vpop.eup %793  ;;  %v315_v39 = vmax.f32 %v211_v28, 1e-24  ;;  %v496_v0 = vpack.c.bf16 %v442_v6, %v441_v55 }
  0xd5   :  { %v314_v29 = vmax.f32 %v209_v14, 1e-24  ;;  %v796_v1 = vpop.eup %795  ;;  %v474_v2 = vmul.f32 %v794_v13, %v1052_v36 }
  0xd6   :  { %805 = vrsqrt.f32 %v315_v39  ;;  %718 = vmatprep.subr.bf16.mxu0 %v496_v0  ;;  %v473_v16 = vmul.f32 %v796_v1, %v1054_v37 }
  0xd7   :  { %807 = vrsqrt.f32 %v314_v29  ;;  %v275_v32 = vpop.xlane.xlu1 %274 }
  0xd8   :  { %v273_v5 = vpop.xlane.xlu0 %272  ;;  %v798_v59 = vpop.eup %797  ;;  %v347_v63 = vmax.f32 %v275_v32, 1e-24  ;;  %v512_v17 = vpack.c.bf16 %v474_v2, %v473_v16 }
  0xd9   :  { %v346_v33 = vmax.f32 %v273_v5, 1e-24  ;;  %v800_v15 = vpop.eup %799  ;;  %v426_v30 = vmul.f32 %v798_v59, %v1060_v40 }
  0xda   :  { %809 = vrsqrt.f32 %v347_v63  ;;  %736 = vmatprep.subr.bf16.mxu1 %v512_v17  ;;  %v425_v62 = vmul.f32 %v800_v15, %v1062_v41 }
  0xdb   :  { %811 = vrsqrt.f32 %v346_v33  ;;  %v179_v36 = vpop.xlane.xlu1 %178 }
  0xdc   :  { %v177_v8 = vpop.xlane.xlu0 %176  ;;  %v802_v20 = vpop.eup %801  ;;  %v299_v38 = vmax.f32 %v179_v36, 1e-24  ;;  %v488_v51 = vpack.c.bf16 %v426_v30, %v425_v62 }
  0xdd   :  { %v298_v37 = vmax.f32 %v177_v8, 1e-24  ;;  %v804_v9 = vpop.eup %803  ;;  %v458_v21 = vmul.f32 %v802_v20, %v1068_v44 }
  0xde   :  { %813 = vrsqrt.f32 %v299_v38  ;;  %719 = vmatpush3.bf16.xpose.msra.mxu0 %v488_v51  ;;  %v457_v31 = vmul.f32 %v804_v9, %v1070_v45 }
  0xdf   :  { %815 = vrsqrt.f32 %v298_v37  ;;  %v243_v40 = vpop.xlane.xlu1 %242 }
  0xe0   :  { %v241_v22 = vpop.xlane.xlu0 %240  ;;  %v806_v58 = vpop.eup %805  ;;  %v331_v23 = vmax.f32 %v243_v40, 1e-24  ;;  %v504_v24 = vpack.c.bf16 %v458_v21, %v457_v31 }
  0xe1   :  { %v330_v41 = vmax.f32 %v241_v22, 1e-24  ;;  %v808_v54 = vpop.eup %807  ;;  %v444_v47 = vmul.f32 %v806_v58, %v1076_v48 }
  0xe2   :  { %817 = vrsqrt.f32 %v331_v23  ;;  %737 = vmatpush3.bf16.xpose.msra.mxu1 %v504_v24  ;;  %v443_v7 = vmul.f32 %v808_v54, %v1078_v49 }
  0xe3   :  { %819 = vrsqrt.f32 %v330_v41  ;;  %v215_v44 = vpop.xlane.xlu1 %214 }
  0xe4   :  { %v213_v25 = vpop.xlane.xlu0 %212  ;;  %v810_v46 = vpop.eup %809  ;;  %v317_v12 = vmax.f32 %v215_v44, 1e-24  ;;  %v497_v6 = vpack.c.bf16 %v444_v47, %v443_v7 }
  0xe5   :  { %v316_v45 = vmax.f32 %v213_v25, 1e-24  ;;  %v812_v55 = vpop.eup %811  ;;  %v476_v28 = vmul.f32 %v810_v46, %v1084_v52 }
  0xe6   :  { %821 = vrsqrt.f32 %v317_v12  ;;  %720 = vmatprep.subr.bf16.mxu0 %v497_v6  ;;  %v475_v14 = vmul.f32 %v812_v55, %v1086_v53 }
  0xe7   :  { %823 = vrsqrt.f32 %v316_v45  ;;  %v279_v48 = vpop.xlane.xlu1 %278 }
  0xe8   :  { %v277_v13 = vpop.xlane.xlu0 %276  ;;  %v814_v39 = vpop.eup %813  ;;  %v349_v29 = vmax.f32 %v279_v48, 1e-24  ;;  %v513_v0 = vpack.c.bf16 %v476_v28, %v475_v14 }
  0xe9   :  { %v348_v49 = vmax.f32 %v277_v13, 1e-24  ;;  %v816_v1 = vpop.eup %815  ;;  %v428_v2 = vmul.f32 %v814_v39, %v1092_v56 }
  0xea   :  { %825 = vrsqrt.f32 %v349_v29  ;;  %738 = vmatprep.subr.bf16.mxu1 %v513_v0  ;;  %v427_v16 = vmul.f32 %v816_v1, %v1094_v57 }
  0xeb   :  { %827 = vrsqrt.f32 %v348_v49  ;;  %v183_v52 = vpop.xlane.xlu1 %182 }
  0xec   :  { %v181_v32 = vpop.xlane.xlu0 %180  ;;  %v818_v5 = vpop.eup %817  ;;  %v301_v59 = vmax.f32 %v183_v52, 1e-24  ;;  %v489_v63 = vpack.c.bf16 %v428_v2, %v427_v16 }
  0xed   :  { %v300_v53 = vmax.f32 %v181_v32, 1e-24  ;;  %v820_v33 = vpop.eup %819  ;;  %v460_v17 = vmul.f32 %v818_v5, %v1100_v60 }
  0xee   :  { %829 = vrsqrt.f32 %v301_v59  ;;  %721 = vmatpush3.bf16.xpose.msra.mxu0 %v489_v63  ;;  %v459_v15 = vmul.f32 %v820_v33, %v1102_v61 }
  0xef   :  { %831 = vrsqrt.f32 %v300_v53  ;;  %v247_v56 = vpop.xlane.xlu1 %246 }
  0xf0   :  { %v245_v30 = vpop.xlane.xlu0 %244  ;;  %v822_v62 = vpop.eup %821  ;;  %v333_v36 = vmax.f32 %v247_v56, 1e-24  ;;  %v505_v8 = vpack.c.bf16 %v460_v17, %v459_v15 }
  0xf1   :  { %v332_v57 = vmax.f32 %v245_v30, 1e-24  ;;  %v824_v20 = vpop.eup %823  ;;  %v446_v38 = vmul.f32 %v822_v62, %v1108_v3  ;;  %v1419_v30 = vld [vmem:[#allocation8_spill] sm:$0xff] }
  0xf2   :  { %833 = vrsqrt.f32 %v333_v36  ;;  %739 = vmatpush3.bf16.xpose.msra.mxu1 %v505_v8  ;;  %v445_v37 = vmul.f32 %v824_v20, %v1110_v4 }
  0xf3   :  { %835 = vrsqrt.f32 %v332_v57  ;;  %v219_v60 = vpop.xlane.xlu1 %218 }
  0xf4   :  { %v217_v51 = vpop.xlane.xlu0 %216  ;;  %v826_v9 = vpop.eup %825  ;;  %v319_v21 = vmax.f32 %v219_v60, 1e-24  ;;  %v498_v31 = vpack.c.bf16 %v446_v38, %v445_v37  ;;  %v1420_v37 = vld [vmem:[#allocation9_spill] sm:$0xff] }
  0xf5   :  { %v318_v61 = vmax.f32 %v217_v51, 1e-24  ;;  %v828_v40 = vpop.eup %827  ;;  %v478_v22 = vmul.f32 %v826_v9, %v1116_v10  ;;  %v1421_v51 = vld [vmem:[#allocation10_spill] sm:$0xff] }
  0xf6   :  { %837 = vrsqrt.f32 %v319_v21  ;;  %722 = vmatprep.subr.bf16.mxu0 %v498_v31  ;;  %v477_v58 = vmul.f32 %v828_v40, %v1118_v11 }
  0xf7   :  { %839 = vrsqrt.f32 %v318_v61  ;;  %v283_v3 = vpop.xlane.xlu1 %282 }
  0xf8   :  { %v281_v23 = vpop.xlane.xlu0 %280  ;;  %v830_v41 = vpop.eup %829  ;;  %v351_v24 = vmax.f32 %v283_v3, 1e-24  ;;  %v514_v54 = vpack.c.bf16 %v478_v22, %v477_v58  ;;  %v1422_v3 = vld [vmem:[#allocation11_spill] sm:$0xff] }
  0xf9   :  { %v350_v4 = vmax.f32 %v281_v23, 1e-24  ;;  %v832_v47 = vpop.eup %831  ;;  %v430_v7 = vmul.f32 %v830_v41, %v1124_v18  ;;  %v1423_v41 = vld [vmem:[#allocation12_spill] sm:$0xff] }
  0xfa   :  { %841 = vrsqrt.f32 %v351_v24  ;;  %740 = vmatprep.subr.bf16.mxu1 %v514_v54  ;;  %v429_v44 = vmul.f32 %v832_v47, %v1126_v19 }
  0xfb   :  { %843 = vrsqrt.f32 %v350_v4  ;;  %v187_v10 = vpop.xlane.xlu1 %186 }
  0xfc   :  { %v185_v25 = vpop.xlane.xlu0 %184  ;;  %v834_v46 = vpop.eup %833  ;;  %v303_v12 = vmax.f32 %v187_v10, 1e-24  ;;  %v490_v45 = vpack.c.bf16 %v430_v7, %v429_v44 }
  0xfd   :  { %v302_v11 = vmax.f32 %v185_v25, 1e-24  ;;  %v836_v6 = vpop.eup %835  ;;  %v462_v55 = vmul.f32 %v834_v46, %v1132_v26  ;;  %v1424_v46 = vld [vmem:[#allocation13_spill] sm:$0xff] }
  0xfe   :  { %845 = vrsqrt.f32 %v303_v12  ;;  %723 = vmatpush3.bf16.xpose.msra.mxu0 %v490_v45  ;;  %v461_v28 = vmul.f32 %v836_v6, %v1134_v27 }
  0xff   :  { %847 = vrsqrt.f32 %v302_v11  ;;  %v251_v18 = vpop.xlane.xlu1 %250  ;;  %v1425_v11 = vld [vmem:[#allocation14_spill] sm:$0xff] }
 0x100   :  { %v249_v14 = vpop.xlane.xlu0 %248  ;;  %v838_v48 = vpop.eup %837  ;;  %v335_v13 = vmax.f32 %v251_v18, 1e-24  ;;  %v506_v39 = vpack.c.bf16 %v462_v55, %v461_v28 }
 0x101   :  { %v334_v19 = vmax.f32 %v249_v14, 1e-24  ;;  %v840_v29 = vpop.eup %839  ;;  %v448_v49 = vmul.f32 %v838_v48, %v1140_v34 }
 0x102   :  { %849 = vrsqrt.f32 %v335_v13  ;;  %741 = vmatpush3.bf16.xpose.msra.mxu1 %v506_v39  ;;  %v447_v0 = vmul.f32 %v840_v29, %v1142_v35  ;;  %v1427_v29 = vld [vmem:[#allocation16_spill] sm:$0xff] }
 0x103   :  { %851 = vrsqrt.f32 %v334_v19  ;;  %v223_v26 = vpop.xlane.xlu1 %222  ;;  %v1426_v19 = vld [vmem:[#allocation15_spill] sm:$0xff] }
 0x104   :  { %v221_v1 = vpop.xlane.xlu0 %220  ;;  %v842_v2 = vpop.eup %841  ;;  %v321_v16 = vmax.f32 %v223_v26, 1e-24  ;;  %v499_v52 = vpack.c.bf16 %v448_v49, %v447_v0 }
 0x105   :  { %v320_v27 = vmax.f32 %v221_v1, 1e-24  ;;  %v844_v32 = vpop.eup %843  ;;  %v480_v5 = vmul.f32 %v842_v2, %v1148_v42 }
 0x106   :  { %853 = vrsqrt.f32 %v321_v16  ;;  %724 = vmatprep.subr.bf16.mxu0 %v499_v52  ;;  %v479_v59 = vmul.f32 %v844_v32, %v1150_v43  ;;  %v1428_v32 = vld [vmem:[#allocation17_spill] sm:$0xff] }
 0x107   :  { %855 = vrsqrt.f32 %v320_v27  ;;  %v287_v34 = vpop.xlane.xlu1 %286 }
 0x108   :  { %v285_v53 = vpop.xlane.xlu0 %284  ;;  %v846_v63 = vpop.eup %845  ;;  %v353_v33 = vmax.f32 %v287_v34, 1e-24  ;;  %v515_v17 = vpack.c.bf16 %v480_v5, %v479_v59  ;;  %v1429_v59 = vld [vmem:[#allocation18_spill] sm:$0xff] }
 0x109   :  { %v352_v35 = vmax.f32 %v285_v53, 1e-24  ;;  %v848_v15 = vpop.eup %847  ;;  %v432_v56 = vmul.f32 %v846_v63, %v1156_v50 }
 0x10a   :  { %857 = vrsqrt.f32 %v353_v33  ;;  %742 = vmatprep.subr.bf16.mxu1 %v515_v17  ;;  %v431_v62 = vmul.f32 %v848_v15, %v1419_v30  ;;  %v1430_v30 = vld [vmem:[#allocation19_spill] sm:$0xff] }
 0x10b   :  { %859 = vrsqrt.f32 %v352_v35  ;;  %v191_v42 = vpop.xlane.xlu1 %190 }
 0x10c   :  { %v189_v36 = vpop.xlane.xlu0 %188  ;;  %v850_v57 = vpop.eup %849  ;;  %v305_v8 = vmax.f32 %v191_v42, 1e-24  ;;  %v491_v20 = vpack.c.bf16 %v432_v56, %v431_v62  ;;  %v1431_v42 = vld [vmem:[#allocation20_spill] sm:$0xff] }
 0x10d   :  { %v304_v43 = vmax.f32 %v189_v36, 1e-24  ;;  %v852_v38 = vpop.eup %851  ;;  %v464_v60 = vmul.f32 %v850_v57, %v1420_v37  ;;  %v1432_v37 = vld [vmem:[#allocation21_spill] sm:$0xff] }
 0x10e   :  { %861 = vrsqrt.f32 %v305_v8  ;;  %725 = vmatpush3.bf16.xpose.msra.mxu0 %v491_v20  ;;  %v463_v9 = vmul.f32 %v852_v38, %v1421_v51  ;;  %v1433_v51 = vld [vmem:[#allocation22_spill] sm:$0xff] }
 0x10f   :  { %863 = vrsqrt.f32 %v304_v43  ;;  %v255_v50 = vpop.xlane.xlu1 %254 }
 0x110   :  { %v253_v21 = vpop.xlane.xlu0 %252  ;;  %v854_v61 = vpop.eup %853  ;;  %v337_v31 = vmax.f32 %v255_v50, 1e-24  ;;  %v507_v22 = vpack.c.bf16 %v464_v60, %v463_v9 }
 0x111   :  { %v336_v40 = vmax.f32 %v253_v21, 1e-24  ;;  %v856_v58 = vpop.eup %855  ;;  %v450_v23 = vmul.f32 %v854_v61, %v1422_v3 }
 0x112   :  { %865 = vrsqrt.f32 %v337_v31  ;;  %743 = vmatpush3.bf16.xpose.msra.mxu1 %v507_v22  ;;  %v449_v24 = vmul.f32 %v856_v58, %v1423_v41  ;;  %v1434_v31 = vld [vmem:[#allocation23_spill] sm:$0xff]  ;;  %v1435_v22 = vld [vmem:[#allocation24_spill] sm:$0xff] }
 0x113   :  { %867 = vrsqrt.f32 %v336_v40  ;;  %v227_v4 = vpop.xlane.xlu1 %226 }
 0x114   :  { %v225_v54 = vpop.xlane.xlu0 %224  ;;  %v858_v47 = vpop.eup %857  ;;  %v323_v7 = vmax.f32 %v227_v4, 1e-24  ;;  %v500_v10 = vpack.c.bf16 %v450_v23, %v449_v24  ;;  %v1436_v24 = vld [vmem:[#allocation25_spill] sm:$0xff] }
 0x115   :  { %v322_v44 = vmax.f32 %v225_v54, 1e-24  ;;  %v860_v25 = vpop.eup %859  ;;  %v482_v12 = vmul.f32 %v858_v47, %v1424_v46  ;;  %v1437_v54 = vld [vmem:[#allocation26_spill] sm:$0xff] }
 0x116   :  { %869 = vrsqrt.f32 %v323_v7  ;;  %726 = vmatprep.subr.bf16.mxu0 %v500_v10  ;;  %v481_v45 = vmul.f32 %v860_v25, %v1425_v11  ;;  %v1438_v10 = vld [vmem:[#allocation27_spill] sm:$0xff] }
 0x117   :  { %871 = vrsqrt.f32 %v322_v44  ;;  %v291_v6 = vpop.xlane.xlu1 %290 }
 0x118   :  { %v289_v55 = vpop.xlane.xlu0 %288  ;;  %v862_v28 = vpop.eup %861  ;;  %v355_v18 = vmax.f32 %v291_v6, 1e-24  ;;  %v516_v48 = vpack.c.bf16 %v482_v12, %v481_v45 }
 0x119   :  { %v354_v14 = vmax.f32 %v289_v55, 1e-24  ;;  %v864_v13 = vpop.eup %863  ;;  %v434_v39 = vmul.f32 %v862_v28, %v1426_v19 }
 0x11a   :  { %873 = vrsqrt.f32 %v355_v18  ;;  %744 = vmatprep.subr.bf16.mxu1 %v516_v48  ;;  %v433_v49 = vmul.f32 %v864_v13, %v1427_v29 }
 0x11b   :  { %875 = vrsqrt.f32 %v354_v14  ;;  %v195_v0 = vpop.xlane.xlu1 %194 }
 0x11c   :  { %v193_v26 = vpop.xlane.xlu0 %192  ;;  %v866_v1 = vpop.eup %865  ;;  %v307_v2 = vmax.f32 %v195_v0, 1e-24  ;;  %v492_v27 = vpack.c.bf16 %v434_v39, %v433_v49  ;;  %v664_v0 = vlaneseq }
 0x11d   :  { %v306_v16 = vmax.f32 %v193_v26, 1e-24  ;;  %v868_v52 = vpop.eup %867  ;;  %v466_v5 = vmul.f32 %v866_v1, %v1428_v32 }
 0x11e   :  { %877 = vrsqrt.f32 %v307_v2  ;;  %727 = vmatpush3.bf16.xpose.msra.mxu0 %v492_v27  ;;  %v465_v34 = vmul.f32 %v868_v52, %v1429_v59  ;;  %v665_v32 = vand.u32 127, %v664_v0 }
 0x11f   :  { %879 = vrsqrt.f32 %v306_v16  ;;  %v259_v53 = vpop.xlane.xlu1 %258 }
 0x120   :  { %v257_v63 = vpop.xlane.xlu0 %256  ;;  %v870_v33 = vpop.eup %869  ;;  %v339_v35 = vmax.f32 %v259_v53, 1e-24  ;;  %v508_v15 = vpack.c.bf16 %v466_v5, %v465_v34  ;;  %v666_v5 = vadd.s32 128, %v665_v32 }
 0x121   :  { %v338_v17 = vmax.f32 %v257_v63, 1e-24  ;;  %v872_v56 = vpop.eup %871  ;;  %v452_v62 = vmul.f32 %v870_v33, %v1430_v30  ;;  %v1329_v63 = vadd.s32 256, %v665_v32  ;;  %v1331_v33 = vadd.s32 384, %v665_v32 }
 0x122   :  { %881 = vrsqrt.f32 %v339_v35  ;;  %745 = vmatpush3.bf16.xpose.msra.mxu1 %v508_v15  ;;  %v451_v36 = vmul.f32 %v872_v56, %v1431_v42 }
 0x123   :  { %883 = vrsqrt.f32 %v338_v17 }
 0x124   :  { %v97_v57 = vpop.xlane.xlu0 %96  ;;  %v874_v8 = vpop.eup %873  ;;  %v501_v20 = vpack.c.bf16 %v452_v62, %v451_v36 }
 0x125   :  { %v98_v43 = vmax.f32 %v97_v57, 1e-24  ;;  %v876_v38 = vpop.eup %875  ;;  %v484_v60 = vmul.f32 %v874_v8, %v1432_v37 }
 0x126   :  { %728 = vmatprep.subr.bf16.mxu0 %v501_v20  ;;  %v483_v9 = vmul.f32 %v876_v38, %v1433_v51 }
 0x127   :  { %885 = vrsqrt.f32 %v98_v43 }
 0x128   :  { %v878_v50 = vpop.eup %877  ;;  %v517_v21 = vpack.c.bf16 %v484_v60, %v483_v9 }
 0x129   :  { %v880_v61 = vpop.eup %879  ;;  %v436_v40 = vmul.f32 %v878_v50, %v1434_v31 }
 0x12a   :  { %746 = vmatprep.subr.bf16.mxu1 %v517_v21  ;;  %v435_v58 = vmul.f32 %v880_v61, %v1435_v22 }
 0x12c   :  { %v882_v3 = vpop.eup %881  ;;  %v493_v23 = vpack.c.bf16 %v436_v40, %v435_v58 }
 0x12d   :  { %v884_v41 = vpop.eup %883  ;;  %v468_v4 = vmul.f32 %v882_v3, %v1436_v24 }
 0x12e   :  { %729 = vmatpush3.bf16.xpose.msra.mxu0 %v493_v23  ;;  %v467_v47 = vmul.f32 %v884_v41, %v1437_v54 }
 0x130   :  { %v509_v44 = vpack.c.bf16 %v468_v4, %v467_v47 }
 0x131   :  { %v886_v7 = vpop.eup %885 }
 0x132   :  { %v420_v25 = vmul.f32 %v886_v7, %v1438_v10  ;;  %747 = vmatpush3.bf16.xpose.msra.mxu1 %v509_v44 }
 0x134   :  { %v485_v46 = vpack.c.bf16 %v420_v25, %v420_v25 }
 0x136   :  { %730 = vmatprep.mubr.bf16.mxu0 %v485_v46  ;;  %748 = vmatprep.mubr.bf16.mxu1 %v485_v46  ;;  %v1327_v59 = vpop.permute.xlu1 %677 }
 0x137   :  { %731 = vmatmul.mubr.bf16.vlgmr.msra.gmra.mrb[0].mxu0 %v485_v46  ;;  %vm679_vm1 = vcmp.eq.s32.totalorder %v665_v32, %v1327_v59  ;;  %vm680_vm2 = vcmp.eq.s32.totalorder %v666_v5, %v1327_v59  ;;  %vm681_vm12 = vcmp.eq.s32.totalorder %v1329_v63, %v1327_v59  ;;  %vm682_vm13 = vcmp.eq.s32.totalorder %v1331_v33, %v1327_v59 }
 0x139   :  { %749 = vmatmul.mubr.bf16.vlgmr.msra.gmra.mrb[0].mxu1 %v485_v46 }
 0x20a   :  { %v1311_v12 = vpop.f32.mrb[0].mxu0 }
 0x20b   :  { %v600_v11 = vmul.f32 %v1311_v12, %v1311_v12  ;;  %v1315_v45 = vpop.f32.mrb[1].mxu0  ;;  %v640_v56 = vmul.f32 0.9553365, %v1311_v12  ;;  %vm652_vm4 = vcmp.gt.f32.partialorder %v1311_v12, -0.9553365 }
 0x20c   :  { %v601_v55 = vmul.f32 %v1315_v45, %v1315_v45  ;;  %v556_v28 = vpop.f32.mrb[2].mxu0  ;;  %v1319_v18 = vpop.f32.mrb[0].mxu1  ;;  %v710_v62 = vadd.f32 -0.08865606, %v1311_v12  ;;  %v641_v36 = vmul.f32 0.9553365, %v1315_v45 }
 0x20d   :  { %v604_v6 = vsub.f32 1.0, %v600_v11  ;;  %v557_v14 = vpop.f32.mrb[3].mxu0  ;;  %v602_v19 = vmul.f32 %v1319_v18, %v1319_v18  ;;  %v1323_v39 = vpop.f32.mrb[1].mxu1  ;;  %vm653_vm6 = vcmp.gt.f32.partialorder %v1315_v45, -0.9553365 }
 0x20e   :  { %v605_v13 = vsub.f32 1.0, %v601_v55  ;;  %v603_v29 = vmul.f32 %v1323_v39, %v1323_v39  ;;  %v597_v49 = vpop.f32.mrb[2].mxu1  ;;  %v711_v38 = vadd.f32 -0.08865606, %v1315_v45  ;;  %v642_v24 = vmul.f32 0.9553365, %v1319_v18 }
 0x20f   :  { %v608_v48 = vmax.f32 %v604_v6, 0.0  ;;  %v606_v1 = vsub.f32 1.0, %v602_v19  ;;  %v598_v16 = vpop.f32.mrb[3].mxu1  ;;  %v643_v7 = vmul.f32 0.9553365, %v1323_v39 }
 0x210   :  { %v609_v26 = vmax.f32 %v605_v13, 0.0  ;;  %v607_v2 = vsub.f32 1.0, %v603_v29  ;;  %v712_v46 = vadd.f32 -0.08865606, %v1319_v18  ;;  %vm654_vm14 = vcmp.gt.f32.partialorder %v1319_v18, -0.9553365 }
 0x211   :  { %887 = vrsqrt.f32 %v608_v48  ;;  %v610_v27 = vmax.f32 %v606_v1, 0.0  ;;  %vm614_vm0 = vcmp.eq.f32.partialorder %v608_v48, inf  ;;  %v617_v35 = vand.u32 2147483648, %v608_v48 }
 0x212   :  { %889 = vrsqrt.f32 %v609_v26  ;;  %v611_v52 = vmax.f32 %v607_v2, 0.0  ;;  %vm616_vm3 = vcmp.eq.f32.partialorder %v608_v48, 0.0  ;;  %vm621_vm5 = vcmp.eq.f32.partialorder %v609_v26, inf }
 0x213   :  { %891 = vrsqrt.f32 %v610_v27  ;;  %v624_v8 = vand.u32 2147483648, %v609_v26  ;;  %vm623_vm7 = vcmp.eq.f32.partialorder %v609_v26, 0.0  ;;  %vm628_vm8 = vcmp.eq.f32.partialorder %v610_v27, inf }
 0x214   :  { %893 = vrsqrt.f32 %v611_v52  ;;  %vm630_vm9 = vcmp.eq.f32.partialorder %v610_v27, 0.0  ;;  %v631_v21 = vand.u32 2147483648, %v610_v27  ;;  %vm635_vm10 = vcmp.eq.f32.partialorder %v611_v52, inf }
 0x215   :  { %vm637_vm11 = vcmp.eq.f32.partialorder %v611_v52, 0.0  ;;  %v638_v40 = vand.u32 2147483648, %v611_v52  ;;  %v713_v6 = vadd.f32 -0.08865606, %v1323_v39  ;;  %vm655_vm15 = vcmp.gt.f32.partialorder %v1323_v39, -0.9553365 }
 0x21b   :  { %v888_v34 = vpop.eup %887 }
 0x21c   :  { %v613_v53 = vmul.f32 %v888_v34, %v608_v48  ;;  %v890_v17 = vpop.eup %889 }
 0x21d   :  { %v620_v42 = vmul.f32 %v890_v17, %v609_v26  ;;  %v892_v43 = vpop.eup %891 }
 0x21e   :  { %v615_v15 = vsel %vm614_vm0, %v608_v48, %v613_v53  ;;  %v894_v37 = vpop.eup %893  ;;  %v627_v9 = vmul.f32 %v892_v43, %v610_v27 }
 0x21f   :  { %v618_v30 = vsel %vm616_vm3, %v617_v35, %v615_v15  ;;  %v622_v20 = vsel %vm621_vm5, %v609_v26, %v620_v42  ;;  %v634_v61 = vmul.f32 %v894_v37, %v611_v52 }
 0x220   :  { %v644_v57 = vmul.f32 0.29552022, %v618_v30  ;;  %v625_v51 = vsel %vm623_vm7, %v624_v8, %v622_v20  ;;  %v629_v31 = vsel %vm628_vm8, %v610_v27, %v627_v9 }
 0x221   :  { %v645_v50 = vmul.f32 0.29552022, %v625_v51  ;;  %v632_v3 = vsel %vm630_vm9, %v631_v21, %v629_v31  ;;  %v636_v23 = vsel %vm635_vm10, %v611_v52, %v634_v61 }
 0x222   :  { %v648_v60 = vsub.f32 %v640_v56, %v644_v57  ;;  %v646_v4 = vmul.f32 0.29552022, %v632_v3  ;;  %v639_v54 = vsel %vm637_vm11, %v638_v40, %v636_v23 }
 0x223   :  { %v649_v58 = vsub.f32 %v641_v36, %v645_v50  ;;  %v647_v44 = vmul.f32 0.29552022, %v639_v54 }
 0x224   :  { %v660_v22 = vsel %vm652_vm4, %v648_v60, %v710_v62  ;;  %v650_v25 = vsub.f32 %v642_v24, %v646_v4 }
 0x225   :  { %v683_v41 = vsel %vm679_vm1, %v660_v22, %v1311_v12  ;;  %v661_v10 = vsel %vm653_vm6, %v649_v58, %v711_v38  ;;  %v651_v11 = vsub.f32 %v643_v7, %v647_v44 }
 0x226   :  { %v687_v47 = vmul.f32 30.0, %v683_v41  ;;  %v684_v12 = vsel %vm680_vm2, %v661_v10, %v1315_v45  ;;  %v662_v28 = vsel %vm654_vm14, %v650_v25, %v712_v46 }
 0x227   :  { %v688_v55 = vmul.f32 30.0, %v684_v12  ;;  %v663_v14 = vsel %vm655_vm15, %v651_v11, %v713_v6  ;;  %v685_v48 = vsel %vm681_vm12, %v662_v28, %v1319_v18 }
 0x228   :  { %691 = vst [vmem:[#allocation5] sm:$0xff] %v687_v47  ;;  %v686_v13 = vsel %vm682_vm13, %v663_v14, %v1323_v39  ;;  %v689_v19 = vmul.f32 30.0, %v685_v48 }
 0x229   :  { %692 = vst [vmem:[#allocation5 + $0x8] sm:$0xff] %v688_v55  ;;  %v690_v45 = vmul.f32 30.0, %v686_v13 }
 0x22a   :  { %693 = vst [vmem:[#allocation5 + $0x10] sm:$0xff] %v689_v19 }
 0x22b   :  { %694 = vst [vmem:[#allocation5 + $0x18] sm:$0xff] %v690_v45 }
 0x22c   :  { %928 = shalt.err (!%p925_p12)
}
 0x22d   :  { %s929_s5 = scalar_lea.hbm %s1378_s3, 512 }
 0x22e   :  { %p930_p13 = scmp.ne.s32.totalorder %s1378_s3, %s929_s5  ;;  %p933_p0 = scmp.lt.u32.totalorder %s929_s5, %s1378_s3 }
 0x230   :  { %p935_p1 = pnand %p933_p0, %p930_p13 }
 0x232   :  { %938 = shalt.err (!%p935_p1)
}
 0x233   :  { %704 = dma.vmem_to_hbm [thread:$0]  %s702_s28, 512, %s1378_s3, [#allocation4]  }
 0x234   :  { %941 = dma.done.wait [#allocation4], 512  }
 0x235   :  { %942 = vsyncadd [#allocation4], 4294966784 }
 0x236   :  { %708 = vsyncpa [#allocation3], 1 }
 0x237   :  { %709 = vsyncpa [#allocation4], 1 }

</bundles_post_ra>
